<compile_context>
chip_gen: v7x
topology: tpu7x:2x2x1
jax: 0.10.0
libtpu: 0.0.40
codegen_flags: <defaults>
</compile_context>

<pallas_src>
import functools

import jax
import jax.numpy as jnp
from jax.experimental import pallas as pl
from jax.experimental.pallas import tpu as pltpu

IN_FEATURES = 20
HIDDEN = 64
H_PAD = 128  # hidden dim padded to a full 128-lane vreg width


def _round_up(n, m):
    return ((n + m - 1) // m) * m


def _cdiv(a, b):
    return -(-a // b)


def mlp_kernel(x_ref, w1_ref, b1_ref, w2_ref, b2_ref, w3_ref, b3_ref, o_ref):
    # x_ref: (block_b, 20) f32 streamed tile; cast to bf16 in-kernel (hides under DMA).
    x = x_ref[...].astype(jnp.bfloat16)
    # fc1: (block_b, 20) @ (20, 128) -> f32 accumulate, bias + relu in f32.
    h1 = jnp.dot(x, w1_ref[...], preferred_element_type=jnp.float32) + b1_ref[...]
    h1 = jnp.maximum(h1, 0.0)
    # fc2: bf16 MXU inputs, f32 accumulation.
    h2 = jnp.dot(h1.astype(jnp.bfloat16), w2_ref[...],
                 preferred_element_type=jnp.float32) + b2_ref[...]
    h2 = jnp.maximum(h2, 0.0)
    # fc3 as (1, 128) x (block_b, 128)^T on the MXU -> lane-dense (1, block_b) row,
    # so the output store is a full unmasked 128-lane store.
    logits = jnp.einsum('oh,bh->ob', w3_ref[...], h2.astype(jnp.bfloat16),
                        preferred_element_type=jnp.float32) + b3_ref[0, 0]
    o_ref[...] = jax.nn.sigmoid(logits)


def _pad_params(params):
    """Pad hidden dim 64 -> 128 (zero pad, incl. biases) and cast matmul weights to bf16."""
    w1, b1, w2, b2, w3, b3 = params
    w1p = jnp.zeros((IN_FEATURES, H_PAD), jnp.bfloat16).at[:, :HIDDEN].set(
        w1.astype(jnp.bfloat16))
    b1p = jnp.zeros((1, H_PAD), jnp.float32).at[:, :HIDDEN].set(b1.reshape(1, HIDDEN))
    w2p = jnp.zeros((H_PAD, H_PAD), jnp.bfloat16).at[:HIDDEN, :HIDDEN].set(
        w2.astype(jnp.bfloat16))
    b2p = jnp.zeros((1, H_PAD), jnp.float32).at[:, :HIDDEN].set(b2.reshape(1, HIDDEN))
    # w3 is a (64, 1) column -> zero-padded (1, 128) bf16 row for the trans-rhs MXU pass.
    w3p = jnp.zeros((1, H_PAD), jnp.bfloat16).at[:, :HIDDEN].set(
        w3.reshape(1, HIDDEN).astype(jnp.bfloat16))
    b3p = b3.reshape(1, 1).astype(jnp.float32)
    return w1p, b1p, w2p, b2p, w3p, b3p


@functools.partial(jax.jit, static_argnames=("block_b_max",))
def simple_nn_forward(x, params, *, block_b_max=8192):
    B, F = x.shape
    assert F == IN_FEATURES
    w1p, b1p, w2p, b2p, w3p, b3p = _pad_params(params)

    # Block sizing: aim for >= 4 grid steps when B is large (v7x megacore sharding and
    # DMA/compute overlap), keep a full 128-lane granule, cap so per-block compute
    # temporaries (~(block_b,128) f32 activations) stay well inside v7x's 64 MiB VMEM.
    block_b = max(128, min(block_b_max, _round_up(_cdiv(B, 4), 128)))
    num_blocks = _cdiv(B, block_b)
    b_pad = num_blocks * block_b
    grid = (num_blocks,)

    def resident(a):  # whole array as one block, same block every grid step -> stays in VMEM
        return pl.BlockSpec(a.shape, lambda i: (0,) * a.ndim)

    flops = 2 * B * (IN_FEATURES * HIDDEN + HIDDEN * HIDDEN + HIDDEN)
    # Tiled/padded HBM traffic: x rows are lane-padded to 128 f32 lanes (~512 B/row)
    # in the on-device layout; the output is a lane-dense f32 row (~4 B/row).
    bytes_accessed = (B * 128 * 4 + b_pad * 4
                      + (w1p.size + w2p.size + w3p.size) * 2
                      + (b1p.size + b2p.size) * 4 + 4)

    out = pl.pallas_call(
        mlp_kernel,
        out_shape=jax.ShapeDtypeStruct((1, b_pad), jnp.float32),
        grid=grid,
        in_specs=[
            pl.BlockSpec((block_b, F), lambda i: (i, 0)),          # streamed f32 x tile
            resident(w1p), resident(b1p),
            resident(w2p), resident(b2p),
            resident(w3p),
            pl.BlockSpec((1, 1), lambda i: (0, 0),
                         memory_space=pltpu.MemorySpace.SMEM),     # scalar b3
        ],
        out_specs=pl.BlockSpec((1, block_b), lambda i: (0, i)),    # lane-dense output row
        compiler_params=pltpu.CompilerParams(
            dimension_semantics=("parallel",),
            vmem_limit_bytes=64 * 1024 * 1024),
        cost_estimate=pl.CostEstimate(flops=flops,
                                      transcendentals=B,
                                      bytes_accessed=bytes_accessed),
    )(x, w1p, b1p, w2p, b2p, w3p, b3p)
    # Padded tail columns (rows beyond B) are garbage by construction and sliced off here;
    # rows are independent so they never feed valid outputs.
    return out[0, :B].reshape(B, 1)


def init_params(key):
    # Deterministic init matching nn.Linear shapes (stored transposed vs torch):
    #   fc1: (20 -> 64), fc2: (64 -> 64), fc3: (64 -> 1)
    k1, k2, k3, k4, k5, k6 = jax.random.split(key, 6)

    def uinit(k, shape, fan_in):
        bound = 1.0 / jnp.sqrt(fan_in)
        return jax.random.uniform(k, shape, jnp.float32, -bound, bound)

    w1 = uinit(k1, (IN_FEATURES, HIDDEN), IN_FEATURES)
    b1 = uinit(k2, (HIDDEN,), IN_FEATURES)
    w2 = uinit(k3, (HIDDEN, HIDDEN), HIDDEN)
    b2 = uinit(k4, (HIDDEN,), HIDDEN)
    w3 = uinit(k5, (HIDDEN, 1), HIDDEN)
    b3 = uinit(k6, (1,), HIDDEN)
    return (w1, b1, w2, b2, w3, b3)


if __name__ == "__main__":
    key = jax.random.PRNGKey(0)
    pkey, xkey = jax.random.split(key)
    params = init_params(pkey)
    x = jax.random.normal(xkey, (8, IN_FEATURES), jnp.float32)  # batch=8, in_features=20

    out = simple_nn_forward(x, params)
    out = jax.block_until_ready(out)

    # Reference check in plain f32 JAX (kernel uses bf16 matmul inputs -> loose atol).
    w1, b1, w2, b2, w3, b3 = params
    h1 = jnp.maximum(x @ w1 + b1, 0.0)
    h2 = jnp.maximum(h1 @ w2 + b2, 0.0)
    ref = jax.nn.sigmoid(h2 @ w3 + b3)

    assert out.shape == (8, 1)
    assert jnp.allclose(out, ref, atol=2e-2), "mismatch vs reference"
    print("KERNEL_OK")
</pallas_src>

<mosaic_0001>
module attributes {stable_mosaic.version = 11 : i64} {
  func.func @mlp_kernel(%arg0: i32, %arg1: memref<128x20xf32, #tpu.memory_space<vmem>>, %arg2: memref<20x128xbf16, #tpu.memory_space<vmem>>, %arg3: memref<1x128xf32, #tpu.memory_space<vmem>>, %arg4: memref<128x128xbf16, #tpu.memory_space<vmem>>, %arg5: memref<1x128xf32, #tpu.memory_space<vmem>>, %arg6: memref<1x128xbf16, #tpu.memory_space<vmem>>, %arg7: memref<1x1xf32, #tpu.memory_space<smem>>, %arg8: memref<1x128xf32, #tpu.memory_space<vmem>>) attributes {dimension_semantics = [#tpu.dimension_semantics<parallel>], iteration_bounds = array<i64: 1>, scalar_prefetch = 0 : i64, scratch_operands = 0 : i64, tpu.core_type = #tpu.core_type<tc>, window_params = [{transform_indices = @transform_0, window_bounds = array<i64: 128, 20>}, {pipeline_mode = #tpu.pipeline_mode<synchronous>, transform_indices = @transform_1, window_bounds = array<i64: 20, 128>}, {pipeline_mode = #tpu.pipeline_mode<synchronous>, transform_indices = @transform_2, window_bounds = array<i64: 1, 128>}, {pipeline_mode = #tpu.pipeline_mode<synchronous>, transform_indices = @transform_3, window_bounds = array<i64: 128, 128>}, {pipeline_mode = #tpu.pipeline_mode<synchronous>, transform_indices = @transform_4, window_bounds = array<i64: 1, 128>}, {pipeline_mode = #tpu.pipeline_mode<synchronous>, transform_indices = @transform_5, window_bounds = array<i64: 1, 128>}, {transform_indices = @transform_6, window_bounds = array<i64: 1, 1>}, {transform_indices = @transform_7, window_bounds = array<i64: 1, 128>}]} {
    %c0 = arith.constant 0 : index
    %c0_0 = arith.constant 0 : index
    %0 = vector.load %arg1[%c0, %c0_0] : memref<128x20xf32, #tpu.memory_space<vmem>>, vector<128x20xf32>
    %1 = arith.truncf %0 : vector<128x20xf32> to vector<128x20xbf16>
    %c0_1 = arith.constant 0 : index
    %c0_2 = arith.constant 0 : index
    %2 = vector.load %arg2[%c0_1, %c0_2] : memref<20x128xbf16, #tpu.memory_space<vmem>>, vector<20x128xbf16>
    %cst = arith.constant dense<0.000000e+00> : vector<128x128xf32>
    %3 = tpu.matmul %1, %2, %cst {dimension_numbers = #tpu.dot_dimension_numbers<[1], [0], [0], [1], [0, 0, 1, 1], [], []>} : vector<128x20xbf16>, vector<20x128xbf16>, vector<128x128xf32> -> vector<128x128xf32>
    %c0_3 = arith.constant 0 : index
    %c0_4 = arith.constant 0 : index
    %4 = vector.load %arg3[%c0_3, %c0_4] : memref<1x128xf32, #tpu.memory_space<vmem>>, vector<1x128xf32>
    %5 = vector.broadcast %4 : vector<1x128xf32> to vector<128x128xf32>
    %6 = arith.addf %3, %5 : vector<128x128xf32>
    %cst_5 = arith.constant 0.000000e+00 : f32
    %7 = vector.broadcast %cst_5 : f32 to vector<128x128xf32>
    %8 = arith.maximumf %6, %7 : vector<128x128xf32>
    %9 = arith.truncf %8 : vector<128x128xf32> to vector<128x128xbf16>
    %c0_6 = arith.constant 0 : index
    %c0_7 = arith.constant 0 : index
    %10 = vector.load %arg4[%c0_6, %c0_7] : memref<128x128xbf16, #tpu.memory_space<vmem>>, vector<128x128xbf16>
    %cst_8 = arith.constant dense<0.000000e+00> : vector<128x128xf32>
    %11 = tpu.matmul %9, %10, %cst_8 {dimension_numbers = #tpu.dot_dimension_numbers<[1], [0], [0], [1], [0, 0, 1, 1], [], []>} : vector<128x128xbf16>, vector<128x128xbf16>, vector<128x128xf32> -> vector<128x128xf32>
    %c0_9 = arith.constant 0 : index
    %c0_10 = arith.constant 0 : index
    %12 = vector.load %arg5[%c0_9, %c0_10] : memref<1x128xf32, #tpu.memory_space<vmem>>, vector<1x128xf32>
    %13 = vector.broadcast %12 : vector<1x128xf32> to vector<128x128xf32>
    %14 = arith.addf %11, %13 : vector<128x128xf32>
    %cst_11 = arith.constant 0.000000e+00 : f32
    %15 = vector.broadcast %cst_11 : f32 to vector<128x128xf32>
    %16 = arith.maximumf %14, %15 : vector<128x128xf32>
    %c0_12 = arith.constant 0 : index
    %c0_13 = arith.constant 0 : index
    %17 = vector.load %arg6[%c0_12, %c0_13] : memref<1x128xbf16, #tpu.memory_space<vmem>>, vector<1x128xbf16>
    %18 = arith.truncf %16 : vector<128x128xf32> to vector<128x128xbf16>
    "tpu.trace_start"() <{level = 10 : i32, message = "oh,bh->ob"}> : () -> ()
    %cst_14 = arith.constant dense<0.000000e+00> : vector<1x128xf32>
    %19 = tpu.matmul %17, %18, %cst_14 {dimension_numbers = #tpu.dot_dimension_numbers<[1], [1], [0], [0], [0, 0, 1, 0], [], []>} : vector<1x128xbf16>, vector<128x128xbf16>, vector<1x128xf32> -> vector<1x128xf32>
    "tpu.trace_stop"() : () -> ()
    %c0_15 = arith.constant 0 : index
    %c0_16 = arith.constant 0 : index
    %20 = memref.load %arg7[%c0_15, %c0_16] : memref<1x1xf32, #tpu.memory_space<smem>>
    %21 = vector.broadcast %20 : f32 to vector<1x128xf32>
    %22 = arith.addf %19, %21 : vector<1x128xf32>
    %23 = arith.negf %22 : vector<1x128xf32>
    %24 = math.exp %23 : vector<1x128xf32>
    %cst_17 = arith.constant 1.000000e+00 : f32
    %25 = vector.broadcast %cst_17 : f32 to vector<1x128xf32>
    %26 = arith.addf %25, %24 : vector<1x128xf32>
    %27 = arith.divf %25, %26 : vector<1x128xf32>
    %c0_18 = arith.constant 0 : index
    %c0_19 = arith.constant 0 : index
    %28 = vector.load %arg8[%c0_18, %c0_19] : memref<1x128xf32, #tpu.memory_space<vmem>>, vector<1x128xf32>
    tpu.vector_store %arg8[%c0_18, %c0_19], %27 {strides = array<i32>} : memref<1x128xf32, #tpu.memory_space<vmem>>, vector<1x128xf32>,
    return
  }
  func.func @transform_0(%arg0: i32) -> (i32, i32) {
    %c0_i32 = arith.constant 0 : i32
    %c0_i32_0 = arith.constant 0 : i32
    return %arg0, %c0_i32 : i32, i32
  }
  func.func @transform_1(%arg0: i32) -> (i32, i32) {
    %c0_i32 = arith.constant 0 : i32
    %c0_i32_0 = arith.constant 0 : i32
    %c0_i32_1 = arith.constant 0 : i32
    return %c0_i32, %c0_i32_0 : i32, i32
  }
  func.func @transform_2(%arg0: i32) -> (i32, i32) {
    %c0_i32 = arith.constant 0 : i32
    %c0_i32_0 = arith.constant 0 : i32
    %c0_i32_1 = arith.constant 0 : i32
    return %c0_i32, %c0_i32_0 : i32, i32
  }
  func.func @transform_3(%arg0: i32) -> (i32, i32) {
    %c0_i32 = arith.constant 0 : i32
    %c0_i32_0 = arith.constant 0 : i32
    %c0_i32_1 = arith.constant 0 : i32
    return %c0_i32, %c0_i32_0 : i32, i32
  }
  func.func @transform_4(%arg0: i32) -> (i32, i32) {
    %c0_i32 = arith.constant 0 : i32
    %c0_i32_0 = arith.constant 0 : i32
    %c0_i32_1 = arith.constant 0 : i32
    return %c0_i32, %c0_i32_0 : i32, i32
  }
  func.func @transform_5(%arg0: i32) -> (i32, i32) {
    %c0_i32 = arith.constant 0 : i32
    %c0_i32_0 = arith.constant 0 : i32
    %c0_i32_1 = arith.constant 0 : i32
    return %c0_i32, %c0_i32_0 : i32, i32
  }
  func.func @transform_6(%arg0: i32) -> (i32, i32) {
    %c0_i32 = arith.constant 0 : i32
    %c0_i32_0 = arith.constant 0 : i32
    %c0_i32_1 = arith.constant 0 : i32
    return %c0_i32, %c0_i32_0 : i32, i32
  }
  func.func @transform_7(%arg0: i32) -> (i32, i32) {
    %c0_i32 = arith.constant 0 : i32
    %c0_i32_0 = arith.constant 0 : i32
    return %c0_i32, %arg0 : i32, i32
  }
}

</mosaic_0001>

<bundles_post_ra>
// kernel: simple_nn_forward.1
= control target key start
LH: loop header
LB: loop body
LE: loop exit
PB: predicated region body
PF: predicated region fallthrough
CT: control target
= control target key end

     0   :  { %13 = vsyncpa [#allocation4], 0  ;;  %s1035_s0 = inlined_call_operand.hbm [shape: f32[8,20], index: 0, kind: input, shape index: {}]   ;;  %s1036_s1 = inlined_call_operand.hbm [shape: bf16[20,128], index: 1, kind: input, shape index: {}]   ;;  %s1037_s2 = inlined_call_operand.hbm [shape: f32[1,128], index: 2, kind: input, shape index: {}]   ;;  %s1038_s3 = inlined_call_operand.hbm [shape: bf16[128,128], index: 3, kind: input, shape index: {}]   ;;  %s1039_s4 = inlined_call_operand.hbm [shape: f32[1,128], index: 4, kind: input, shape index: {}]   ;;  %s1040_s5 = inlined_call_operand.hbm [shape: bf16[1,128], index: 5, kind: input, shape index: {}]   ;;  %s1041_s6 = inlined_call_operand.<no memory space> [shape: f32[1,1], index: 6, kind: input, shape index: {}]   ;;  %s1042_s7 = inlined_call_operand.hbm [shape: f32[1,128], index: 7, kind: output, shape index: {}]  }
   0x1   :  { %14 = vsyncpa [#allocation7], 0 }
   0x2   :  { %15 = vsyncpa [#allocation10], 0 }
   0x3   :  { %16 = vsyncpa [#allocation13], 0 }
   0x4   :  { %17 = vsyncpa [#allocation5], 0 }
   0x5   :  { %22 = vsyncadd [#allocation4], 1920  ;;  %s878_s24 = smov [#allocation6]   ;;  %s714_s28 = scalar_lea.hbm %s1036_s1, 192 }
   0x6   :  { %s35_s25 = sshll.u32 %s878_s24, 4  ;;  %p715_p0 = scmp.ne.s32.totalorder %s1036_s1, %s714_s28  ;;  %s36_s25 = int_to_ptr.vmem [resolvable:$true] %s35_s25 }
   0x7   :  { %p718_p1 = scmp.lt.u32.totalorder %s714_s28, %s1036_s1 }
   0x9   :  { %p720_p2 = pnand %p718_p1, %p715_p0 }
   0xb   :  { %723 = shalt.err (!%p720_p2)
}
   0xc   :  { %s724_s10 = scalar_lea.vmem %s36_s25, 192  ;;  %p729_p4 = scmp.lt.s32.totalorder %s36_s25, %s36_s25 }
   0xd   :  { %p725_p3 = scmp.ne.s32.totalorder %s36_s25, %s724_s10  ;;  %p730_p5 = scmp.lt.s32.totalorder %s724_s10, %s724_s10 }
   0xf   :  { %p731_p6 = por %p730_p5, %p729_p4 }
  0x11   :  { %p732_p7 = pnand %p731_p6, %p725_p3 }
  0x13   :  { %735 = shalt.err (!%p732_p7)
}
  0x14   :  { %s879_s11 = smov 64   ;;  %s880_s12 = smov 4  }
  0x15   :  { %41 = dma.hbm_to_vmem [thread:$0]  %s1036_s1, 192, %s36_s25, [#allocation7], %s879_s11, %s879_s11, %s880_s12  }
  0x16   :  { %s881_s15 = smov [#allocation9]   ;;  %s882_s17 = smov [#allocation3]  }
  0x17   :  { %s57_s16 = sshll.u32 %s881_s15, 4  ;;  %s23_s18 = sshll.u32 %s882_s17, 4  ;;  %s58_s16 = int_to_ptr.vmem [resolvable:$true] %s57_s16  ;;  %s24_s18 = int_to_ptr.vmem [resolvable:$true] %s23_s18 }
  0x18   :  { %s736_s21 = scalar_lea.hbm %s1038_s3, 1024 }
  0x19   :  { %p737_p8 = scmp.ne.s32.totalorder %s1038_s3, %s736_s21  ;;  %p740_p9 = scmp.lt.u32.totalorder %s736_s21, %s1038_s3 }
  0x1b   :  { %p742_p10 = pnand %p740_p9, %p737_p8 }
  0x1d   :  { %745 = shalt.err (!%p742_p10)
}
  0x1e   :  { %s746_s1 = scalar_lea.vmem %s58_s16, 1024  ;;  %p751_p12 = scmp.lt.s32.totalorder %s58_s16, %s58_s16 }
  0x1f   :  { %p747_p11 = scmp.ne.s32.totalorder %s58_s16, %s746_s1  ;;  %p752_p13 = scmp.lt.s32.totalorder %s746_s1, %s746_s1 }
  0x21   :  { %p753_p0 = por %p752_p13, %p751_p12 }
  0x23   :  { %p754_p1 = pnand %p753_p0, %p747_p11 }
  0x25   :  { %757 = shalt.err (!%p754_p1)
}
  0x26   :  { %63 = dma.hbm_to_vmem [thread:$0]  %s1038_s3, 1024, %s58_s16, [#allocation10], %s879_s11, %s879_s11, %s880_s12  }
  0x27   :  { %s758_s30 = scalar_lea.hbm %s1035_s0, 128 }
  0x28   :  { %p759_p2 = scmp.ne.s32.totalorder %s1035_s0, %s758_s30  ;;  %p762_p3 = scmp.lt.u32.totalorder %s758_s30, %s1035_s0 }
  0x2a   :  { %p764_p4 = pnand %p762_p3, %p759_p2 }
  0x2c   :  { %767 = shalt.err (!%p764_p4)
}
  0x2d   :  { %s768_s14 = scalar_lea.vmem %s24_s18, 128  ;;  %s772_s15 = scalar_lea.vmem %s24_s18, 2048 }
  0x2e   :  { %p769_p5 = scmp.ne.s32.totalorder %s24_s18, %s768_s14  ;;  %p773_p6 = scmp.lt.s32.totalorder %s24_s18, %s24_s18 }
  0x2f   :  { %p774_p7 = scmp.lt.s32.totalorder %s772_s15, %s768_s14 }
  0x31   :  { %p775_p8 = por %p774_p7, %p773_p6 }
  0x33   :  { %p776_p9 = pnand %p775_p8, %p769_p5 }
  0x35   :  { %779 = shalt.err (!%p776_p9)
}
  0x36   :  { %s883_s3 = smov 128   ;;  %s884_s11 = smov 8  }
  0x37   :  { %29 = dma.hbm_to_vmem [thread:$0]  %s1035_s0, 128, %s24_s18, [#allocation4], %s883_s3, %s883_s3, %s884_s11  }
  0x38   :  { %s885_s17 = smov [#allocation8]   ;;  %s886_s20 = smov [#allocation11]  }
  0x39   :  { %s48_s19 = sshll.u32 %s885_s17, 4  ;;  %s70_s21 = sshll.u32 %s886_s20, 4  ;;  %s49_s19 = int_to_ptr.vmem [resolvable:$true] %s48_s19  ;;  %s71_s21 = int_to_ptr.vmem [resolvable:$true] %s70_s21 }
  0x3a   :  { %s780_s24 = scalar_lea.hbm %s1037_s2, 16 }
  0x3b   :  { %p781_p10 = scmp.ne.s32.totalorder %s1037_s2, %s780_s24  ;;  %p784_p11 = scmp.lt.u32.totalorder %s780_s24, %s1037_s2 }
  0x3d   :  { %p786_p12 = pnand %p784_p11, %p781_p10 }
  0x3f   :  { %789 = shalt.err (!%p786_p12)
}
  0x40   :  { %s790_s0 = scalar_lea.vmem %s49_s19, 16  ;;  %s794_s18 = scalar_lea.vmem %s49_s19, 32 }
  0x41   :  { %p791_p13 = scmp.ne.s32.totalorder %s49_s19, %s790_s0  ;;  %p795_p0 = scmp.lt.s32.totalorder %s49_s19, %s49_s19 }
  0x42   :  { %p796_p1 = scmp.lt.s32.totalorder %s794_s18, %s790_s0 }
  0x44   :  { %p797_p2 = por %p796_p1, %p795_p0 }
  0x46   :  { %p798_p3 = pnand %p797_p2, %p791_p13 }
  0x48   :  { %801 = shalt.err (!%p798_p3)
}
  0x49   :  { %51 = dma.hbm_to_vmem [thread:$0]  %s1037_s2, 16, %s49_s19, [#allocation7]  }
  0x4a   :  { %s802_s9 = scalar_lea.hbm %s1039_s4, 16 }
  0x4b   :  { %p803_p4 = scmp.ne.s32.totalorder %s1039_s4, %s802_s9  ;;  %p806_p5 = scmp.lt.u32.totalorder %s802_s9, %s1039_s4 }
  0x4d   :  { %p808_p6 = pnand %p806_p5, %p803_p4 }
  0x4f   :  { %811 = shalt.err (!%p808_p6)
}
  0x50   :  { %s812_s3 = scalar_lea.vmem %s71_s21, 16  ;;  %s816_s11 = scalar_lea.vmem %s71_s21, 32 }
  0x51   :  { %p813_p7 = scmp.ne.s32.totalorder %s71_s21, %s812_s3  ;;  %p817_p8 = scmp.lt.s32.totalorder %s71_s21, %s71_s21 }
  0x52   :  { %p818_p9 = scmp.lt.s32.totalorder %s816_s11, %s812_s3 }
  0x54   :  { %p819_p10 = por %p818_p9, %p817_p8 }
  0x56   :  { %p820_p11 = pnand %p819_p10, %p813_p7 }
  0x58   :  { %823 = shalt.err (!%p820_p11)
}
  0x59   :  { %73 = dma.hbm_to_vmem [thread:$0]  %s1039_s4, 16, %s71_s21, [#allocation10]  }
  0x5a   :  { %s887_s16 = smov [#allocation12]   ;;  %s824_s22 = scalar_lea.hbm %s1040_s5, 16 }
  0x5b   :  { %s80_s17 = sshll.u32 %s887_s16, 4  ;;  %p825_p12 = scmp.ne.s32.totalorder %s1040_s5, %s824_s22  ;;  %s81_s17 = int_to_ptr.vmem [resolvable:$true] %s80_s17 }
  0x5c   :  { %p828_p13 = scmp.lt.u32.totalorder %s824_s22, %s1040_s5 }
  0x5e   :  { %p830_p0 = pnand %p828_p13, %p825_p12 }
  0x60   :  { %833 = shalt.err (!%p830_p0)
}
  0x61   :  { %s834_s25 = scalar_lea.vmem %s81_s17, 16  ;;  %s838_s4 = scalar_lea.vmem %s81_s17, 32 }
  0x62   :  { %p835_p1 = scmp.ne.s32.totalorder %s81_s17, %s834_s25  ;;  %p839_p2 = scmp.lt.s32.totalorder %s81_s17, %s81_s17 }
  0x63   :  { %p840_p3 = scmp.lt.s32.totalorder %s838_s4, %s834_s25 }
  0x65   :  { %p841_p4 = por %p840_p3, %p839_p2 }
  0x67   :  { %p842_p5 = pnand %p841_p4, %p835_p1 }
  0x69   :  { %845 = shalt.err (!%p842_p5)
}
  0x6a   :  { %83 = dma.hbm_to_vmem [thread:$0]  %s1040_s5, 16, %s81_s17, [#allocation13]  }
  0x6b   :  { %868 = dma.done.wait [#allocation4], 2048  }
  0x6c   :  { %869 = vsyncadd [#allocation4], 4294965248 }
  0x6d   :  { %870 = dma.done.wait [#allocation7], 208  }
  0x6e   :  { %871 = vsyncadd [#allocation7], 4294967088 }
  0x6f   :  { %872 = dma.done.wait [#allocation10], 1040  }
  0x70   :  { %873 = vsyncadd [#allocation10], 4294966256 }
  0x71   :  { %874 = dma.done.wait [#allocation13], 16  }
  0x72   :  { %875 = vsyncadd [#allocation13], 4294967280  ;;  %v700_v0 = vld [vmem:[#allocation6] sm:$0xff]   ;;  %vm173_vm0 = vcmask 1041408   ;;  %v106_v3 = vld [vmem:[#allocation3 + $0x8] sm:$0xff]  ;;  %vm148_vm1 = vcmask 162816  }
  0x73   :  { %v701_v1 = vld [vmem:[#allocation6 + $0x8] ss:$0 sps:$4 sm:$0x33]   ;;  %v105_v2 = vld [vmem:[#allocation3] sm:$0xff]  ;;  %614 = vmatprep.subr.bf16.mxu1 %v700_v0  ;;  %v107_v5 = vld [vmem:[#allocation3 + $0x10] sm:$0xff]  ;;  %vm889_vm2 = vmmov 0  }
  0x74   :  { %615 = vmatpush3.bf16.msra.mxu1 %v700_v0  ;;  %v121_v4 = vpack.c.bf16 %v106_v3, %v105_v2  ;;  %v108_v6 = vld [vmem:[#allocation3 + $0x18] sm:$0xff]  ;;  %v175_v7 = vsel %vm173_vm0, %v701_v1, 0  ;;  %v109_v8 = vld [vmem:[#allocation3 + $0x20] sm:$0xff]  ;;  %v110_v9 = vld [vmem:[#allocation3 + $0x28] sm:$0xff]  ;;  %s890_s18 = smov [#allocation14]  }
  0x75   :  { %686 = vmatprep.subr.msk.bf16.mxu1 %vm173_vm0, %v701_v1  ;;  %v122_v10 = vpack.c.bf16 %v108_v6, %v107_v5  ;;  %v123_v11 = vpack.c.bf16 %v110_v9, %v109_v8  ;;  %v702_v12 = vld [vmem:[#allocation9] sm:$0xff]   ;;  %v703_v13 = vld [vmem:[#allocation9 + $0x8] sm:$0xff]   ;;  %v113_v16 = vld [vmem:[#allocation3 + $0x40] sm:$0xff]  ;;  %s546_s28 = sshll.u32 %s890_s18, 4  ;;  %s547_s28 = int_to_ptr.vmem [resolvable:$true] %s546_s28 }
  0x76   :  { %618 = vmatprep.mubr.msk.bf16.mxu1 %vm148_vm1, %v121_v4  ;;  %v111_v14 = vld [vmem:[#allocation3 + $0x30] sm:$0xff]  ;;  %v112_v15 = vld [vmem:[#allocation3 + $0x38] sm:$0xff]  ;;  %v114_v17 = vld [vmem:[#allocation3 + $0x48] sm:$0xff]  ;;  %s846_s29 = scalar_lea.vmem %s547_s28, 16  ;;  %s850_s30 = scalar_lea.vmem %s547_s28, 32 }
  0x77   :  { %v704_v18 = vld [vmem:[#allocation9 + $0x10] sm:$0xff]   ;;  %v124_v19 = vpack.c.bf16 %v112_v15, %v111_v14  ;;  %v125_v20 = vpack.c.bf16 %v114_v17, %v113_v16  ;;  %v705_v21 = vld [vmem:[#allocation9 + $0x18] sm:$0xff]   ;;  %v115_v22 = vld [vmem:[#allocation3 + $0x50] sm:$0xff]  ;;  %p847_p6 = scmp.ne.s32.totalorder %s547_s28, %s846_s29  ;;  %p851_p7 = scmp.lt.s32.totalorder %s547_s28, %s547_s28 }
  0x78   :  { %617 = vmatpush3.bf16.msra.mxu1 %v175_v7  ;;  %v116_v23 = vld [vmem:[#allocation3 + $0x58] sm:$0xff]  ;;  %v117_v24 = vld [vmem:[#allocation3 + $0x60] sm:$0xff]  ;;  %v118_v25 = vld [vmem:[#allocation3 + $0x68] sm:$0xff]  ;;  %p852_p8 = scmp.lt.s32.totalorder %s850_s30, %s846_s29 }
  0x79   :  { %634 = vmatprep.subr.bf16.mxu1 %v702_v12  ;;  %v706_v26 = vld [vmem:[#allocation9 + $0x20] sm:$0xff]   ;;  %v126_v27 = vpack.c.bf16 %v116_v23, %v115_v22  ;;  %v127_v28 = vpack.c.bf16 %v118_v25, %v117_v24  ;;  %v707_v29 = vld [vmem:[#allocation9 + $0x28] sm:$0xff]   ;;  %v708_v33 = vld [vmem:[#allocation9 + $0x30] sm:$0xff]  }
  0x7a   :  { %v119_v30 = vld [vmem:[#allocation3 + $0x70] sm:$0xff]  ;;  %v120_v31 = vld [vmem:[#allocation3 + $0x78] sm:$0xff]  ;;  %v709_v34 = vld [vmem:[#allocation9 + $0x38] sm:$0xff]   ;;  %p853_p9 = por %p852_p8, %p851_p7 }
  0x7b   :  { %619 = vmatmul.mubr.msk.bf16.vlgmr.msra.gmra.mrb[0].mxu1 %vm148_vm1, %v122_v10  ;;  %v128_v32 = vpack.c.bf16 %v120_v31, %v119_v30  ;;  %v558_v35 = vld [vmem:[#allocation8] ss:$0 sm:$0xff] }
  0x7c   :  { %622 = vmatprep.mubr.msk.bf16.mxu1 %vm148_vm1, %v123_v11  ;;  %635 = vmatpush3.bf16.msra.mxu1 %v702_v12  ;;  %p854_p10 = pnand %p853_p9, %p847_p6 }
  0x7d   :  { %636 = vmatprep.subr.bf16.mxu1 %v703_v13 }
  0x80   :  { %637 = vmatpush3.bf16.msra.mxu1 %v703_v13 }
  0x81   :  { %638 = vmatprep.subr.bf16.mxu1 %v704_v18 }
  0x83   :  { %623 = vmatmul.mubr.msk.bf16.gmra.mrb[4].mxu1 %vm148_vm1, %v124_v19 }
  0x84   :  { %626 = vmatprep.mubr.msk.bf16.mxu1 %vm148_vm1, %v125_v20  ;;  %639 = vmatpush3.bf16.msra.mxu1 %v704_v18 }
  0x85   :  { %640 = vmatprep.subr.bf16.mxu1 %v705_v21 }
  0x88   :  { %641 = vmatpush3.bf16.msra.mxu1 %v705_v21 }
  0x89   :  { %642 = vmatprep.subr.bf16.mxu1 %v706_v26 }
  0x8b   :  { %627 = vmatmul.mubr.msk.bf16.gmra.mrb[8].mxu1 %vm148_vm1, %v126_v27 }
  0x8c   :  { %630 = vmatprep.mubr.msk.bf16.mxu1 %vm148_vm1, %v127_v28  ;;  %643 = vmatpush3.bf16.msra.mxu1 %v706_v26  ;;  %v888_v28 = vmov 0.0  }
  0x8d   :  { %644 = vmatprep.subr.bf16.mxu1 %v707_v29  ;;  %666 = vmatprep.subr.bf16.mxu0 %v888_v28 }
  0x8e   :  { %682 = vmatprep.mubr.msk.bf16.mxu0 %vm889_vm2, %v888_v28 }
  0x90   :  { %645 = vmatpush3.bf16.msra.mxu1 %v707_v29  ;;  %v569_v29 = vld [vmem:[#allocation11] ss:$0 sm:$0xff] }
  0x91   :  { %646 = vmatprep.subr.bf16.mxu1 %v708_v33 }
  0x93   :  { %631 = vmatmul.mubr.msk.bf16.gmra.mrb[12].mxu1 %vm148_vm1, %v128_v32 }
  0x94   :  { %647 = vmatpush3.bf16.msra.mxu1 %v708_v33 }
  0x95   :  { %648 = vmatprep.subr.bf16.mxu1 %v709_v34 }
  0x98   :  { %649 = vmatpush3.bf16.msra.mxu1 %v709_v34 }
 0x14e   :  { %v620_v36 = vpop.f32.mrb[0].mxu1 }
 0x14f   :  { %v220_v37 = vadd.f32 %v620_v36, %v558_v35  ;;  %v211_v38 = vpop.f32.mrb[1].mxu1 }
 0x150   :  { %v212_v39 = vadd.f32 %v558_v35, %v211_v38  ;;  %v621_v40 = vpop.f32.mrb[2].mxu1 }
 0x151   :  { %v223_v41 = vadd.f32 %v621_v40, %v558_v35  ;;  %v214_v42 = vpop.f32.mrb[3].mxu1  ;;  %v276_v44 = vmax.f32 %v220_v37, 0.0 }
 0x152   :  { %v215_v43 = vadd.f32 %v558_v35, %v214_v42  ;;  %v274_v46 = vmax.f32 %v212_v39, 0.0 }
 0x153   :  { %v277_v45 = vmax.f32 %v223_v41, 0.0 }
 0x154   :  { %v275_v47 = vmax.f32 %v215_v43, 0.0 }
 0x155   :  { %v291_v48 = vpack.c.bf16 %v277_v45, %v276_v44 }
 0x156   :  { %v290_v49 = vpack.c.bf16 %v275_v47, %v274_v46  ;;  %v624_v50 = vpop.f32.mrb[4].mxu1 }
 0x157   :  { %v236_v51 = vadd.f32 %v624_v50, %v558_v35  ;;  %v227_v52 = vpop.f32.mrb[5].mxu1 }
 0x158   :  { %v228_v53 = vadd.f32 %v558_v35, %v227_v52  ;;  %650 = vmatprep.mubr.bf16.mxu1 %v290_v49  ;;  %v625_v54 = vpop.f32.mrb[6].mxu1 }
 0x159   :  { %v280_v55 = vmax.f32 %v236_v51, 0.0  ;;  %v239_v56 = vadd.f32 %v625_v54, %v558_v35  ;;  %651 = vmatmul.mubr.bf16.vlgmr.msra.gmra.mrb[16].mxu1 %v291_v48  ;;  %v230_v57 = vpop.f32.mrb[7].mxu1 }
 0x15a   :  { %v278_v58 = vmax.f32 %v228_v53, 0.0  ;;  %v231_v59 = vadd.f32 %v558_v35, %v230_v57 }
 0x15b   :  { %v281_v60 = vmax.f32 %v239_v56, 0.0 }
 0x15c   :  { %v279_v61 = vmax.f32 %v231_v59, 0.0 }
 0x15d   :  { %v293_v62 = vpack.c.bf16 %v281_v60, %v280_v55 }
 0x15e   :  { %v292_v63 = vpack.c.bf16 %v279_v61, %v278_v58  ;;  %v628_v0 = vpop.f32.mrb[8].mxu1 }
 0x15f   :  { %v252_v1 = vadd.f32 %v628_v0, %v558_v35  ;;  %v243_v2 = vpop.f32.mrb[9].mxu1 }
 0x160   :  { %654 = vmatprep.mubr.bf16.mxu1 %v292_v63  ;;  %v244_v3 = vadd.f32 %v558_v35, %v243_v2  ;;  %v629_v4 = vpop.f32.mrb[10].mxu1 }
 0x161   :  { %655 = vmatmul.mubr.bf16.gmra.mrb[20].mxu1 %v293_v62  ;;  %v284_v5 = vmax.f32 %v252_v1, 0.0  ;;  %v255_v6 = vadd.f32 %v629_v4, %v558_v35  ;;  %v246_v7 = vpop.f32.mrb[11].mxu1 }
 0x162   :  { %v282_v8 = vmax.f32 %v244_v3, 0.0  ;;  %v247_v9 = vadd.f32 %v558_v35, %v246_v7 }
 0x163   :  { %v285_v10 = vmax.f32 %v255_v6, 0.0 }
 0x164   :  { %v283_v11 = vmax.f32 %v247_v9, 0.0 }
 0x165   :  { %v295_v12 = vpack.c.bf16 %v285_v10, %v284_v5 }
 0x166   :  { %v294_v13 = vpack.c.bf16 %v283_v11, %v282_v8  ;;  %v632_v14 = vpop.f32.mrb[12].mxu1 }
 0x167   :  { %v268_v15 = vadd.f32 %v632_v14, %v558_v35  ;;  %v259_v16 = vpop.f32.mrb[13].mxu1 }
 0x168   :  { %658 = vmatprep.mubr.bf16.mxu1 %v294_v13  ;;  %v260_v17 = vadd.f32 %v558_v35, %v259_v16  ;;  %v633_v18 = vpop.f32.mrb[14].mxu1 }
 0x169   :  { %659 = vmatmul.mubr.bf16.gmra.mrb[24].mxu1 %v295_v12  ;;  %v288_v19 = vmax.f32 %v268_v15, 0.0  ;;  %v271_v20 = vadd.f32 %v633_v18, %v558_v35  ;;  %v262_v21 = vpop.f32.mrb[15].mxu1 }
 0x16a   :  { %v286_v22 = vmax.f32 %v260_v17, 0.0  ;;  %v263_v23 = vadd.f32 %v558_v35, %v262_v21 }
 0x16b   :  { %v289_v24 = vmax.f32 %v271_v20, 0.0 }
 0x16c   :  { %v287_v25 = vmax.f32 %v263_v23, 0.0  ;;  %v492_v23 = vstv %s1041_s6 }
 0x16d   :  { %v297_v26 = vpack.c.bf16 %v289_v24, %v288_v19 }
 0x16e   :  { %v296_v27 = vpack.c.bf16 %v287_v25, %v286_v22  ;;  %v482_v22 = vld [vmem:[#allocation12] sm:$0x1] }
 0x170   :  { %662 = vmatprep.mubr.bf16.mxu1 %v296_v27 }
 0x171   :  { %663 = vmatmul.mubr.bf16.gmra.mrb[28].mxu1 %v297_v26 }
 0x22c   :  { %v652_v30 = vpop.f32.mrb[16].mxu1 }
 0x22d   :  { %v412_v31 = vadd.f32 %v652_v30, %v569_v29  ;;  %v403_v32 = vpop.f32.mrb[17].mxu1 }
 0x22e   :  { %v404_v33 = vadd.f32 %v569_v29, %v403_v32  ;;  %v653_v34 = vpop.f32.mrb[18].mxu1 }
 0x22f   :  { %v415_v36 = vadd.f32 %v653_v34, %v569_v29  ;;  %v406_v35 = vpop.f32.mrb[19].mxu1  ;;  %v468_v38 = vmax.f32 %v412_v31, 0.0 }
 0x230   :  { %v407_v37 = vadd.f32 %v569_v29, %v406_v35  ;;  %v466_v40 = vmax.f32 %v404_v33, 0.0 }
 0x231   :  { %v469_v39 = vmax.f32 %v415_v36, 0.0 }
 0x232   :  { %v467_v41 = vmax.f32 %v407_v37, 0.0 }
 0x233   :  { %v484_v42 = vpack.c.bf16 %v469_v39, %v468_v38 }
 0x234   :  { %v656_v43 = vpop.f32.mrb[20].mxu1  ;;  %v483_v44 = vpack.c.bf16 %v467_v41, %v466_v40 }
 0x235   :  { %v428_v45 = vadd.f32 %v656_v43, %v569_v29  ;;  %v419_v46 = vpop.f32.mrb[21].mxu1 }
 0x236   :  { %v420_v47 = vadd.f32 %v569_v29, %v419_v46  ;;  %667 = vmatpush3.bf16.xpose.msra.mxu0 %v483_v44  ;;  %v657_v48 = vpop.f32.mrb[22].mxu1 }
 0x237   :  { %v472_v49 = vmax.f32 %v428_v45, 0.0  ;;  %v431_v50 = vadd.f32 %v657_v48, %v569_v29  ;;  %v422_v51 = vpop.f32.mrb[23].mxu1  ;;  %668 = vmatprep.subr.bf16.mxu0 %v888_v28 }
 0x238   :  { %v470_v52 = vmax.f32 %v420_v47, 0.0  ;;  %v423_v53 = vadd.f32 %v569_v29, %v422_v51 }
 0x239   :  { %v473_v54 = vmax.f32 %v431_v50, 0.0 }
 0x23a   :  { %v471_v55 = vmax.f32 %v423_v53, 0.0 }
 0x23b   :  { %v486_v56 = vpack.c.bf16 %v473_v54, %v472_v49 }
 0x23c   :  { %v485_v57 = vpack.c.bf16 %v471_v55, %v470_v52  ;;  %v660_v58 = vpop.f32.mrb[24].mxu1 }
 0x23d   :  { %v444_v59 = vadd.f32 %v660_v58, %v569_v29  ;;  %v435_v60 = vpop.f32.mrb[25].mxu1 }
 0x23e   :  { %669 = vmatpush3.bf16.xpose.msra.mxu0 %v484_v42  ;;  %v436_v61 = vadd.f32 %v569_v29, %v435_v60  ;;  %v661_v62 = vpop.f32.mrb[26].mxu1 }
 0x23f   :  { %v476_v63 = vmax.f32 %v444_v59, 0.0  ;;  %670 = vmatprep.subr.bf16.mxu0 %v888_v28  ;;  %v447_v0 = vadd.f32 %v661_v62, %v569_v29  ;;  %v438_v1 = vpop.f32.mrb[27].mxu1 }
 0x240   :  { %v474_v2 = vmax.f32 %v436_v61, 0.0  ;;  %v439_v3 = vadd.f32 %v569_v29, %v438_v1 }
 0x241   :  { %v477_v4 = vmax.f32 %v447_v0, 0.0 }
 0x242   :  { %v475_v5 = vmax.f32 %v439_v3, 0.0 }
 0x243   :  { %v488_v6 = vpack.c.bf16 %v477_v4, %v476_v63 }
 0x244   :  { %v487_v7 = vpack.c.bf16 %v475_v5, %v474_v2  ;;  %v664_v8 = vpop.f32.mrb[28].mxu1 }
 0x245   :  { %v460_v9 = vadd.f32 %v664_v8, %v569_v29  ;;  %v451_v10 = vpop.f32.mrb[29].mxu1 }
 0x246   :  { %671 = vmatpush3.bf16.xpose.msra.mxu0 %v485_v57  ;;  %v452_v11 = vadd.f32 %v569_v29, %v451_v10  ;;  %v665_v12 = vpop.f32.mrb[30].mxu1 }
 0x247   :  { %672 = vmatprep.subr.bf16.mxu0 %v888_v28  ;;  %v480_v13 = vmax.f32 %v460_v9, 0.0  ;;  %v463_v14 = vadd.f32 %v665_v12, %v569_v29  ;;  %v454_v15 = vpop.f32.mrb[31].mxu1 }
 0x248   :  { %v478_v16 = vmax.f32 %v452_v11, 0.0  ;;  %v455_v17 = vadd.f32 %v569_v29, %v454_v15 }
 0x249   :  { %v481_v18 = vmax.f32 %v463_v14, 0.0 }
 0x24a   :  { %v479_v19 = vmax.f32 %v455_v17, 0.0 }
 0x24b   :  { %v490_v20 = vpack.c.bf16 %v481_v18, %v480_v13 }
 0x24c   :  { %v489_v21 = vpack.c.bf16 %v479_v19, %v478_v16 }
 0x24e   :  { %673 = vmatpush3.bf16.xpose.msra.mxu0 %v486_v56 }
 0x24f   :  { %674 = vmatprep.subr.bf16.mxu0 %v888_v28 }
 0x256   :  { %675 = vmatpush3.bf16.xpose.msra.mxu0 %v487_v7 }
 0x257   :  { %676 = vmatprep.subr.bf16.mxu0 %v888_v28 }
 0x25e   :  { %677 = vmatpush3.bf16.xpose.msra.mxu0 %v488_v6 }
 0x25f   :  { %678 = vmatprep.subr.bf16.mxu0 %v888_v28 }
 0x266   :  { %679 = vmatpush3.bf16.xpose.msra.mxu0 %v489_v21 }
 0x267   :  { %680 = vmatprep.subr.bf16.mxu0 %v888_v28 }
 0x26e   :  { %681 = vmatpush3.bf16.xpose.msra.mxu0 %v490_v20 }
 0x275   :  { %683 = vmatmul.mubr.bf16.vlgmr.msra.gmra.mrb[0].mxu0 %v482_v22 }
 0x348   :  { %v527_v24 = vpop.f32.mrb[0].mxu0 }
 0x349   :  { %v528_v25 = vadd.f32 %v527_v24, %v492_v23  ;;  %v684_v26 = vpop.f32.mrb[1].mxu0 }
 0x34a   :  { %v530_v27 = vpop.f32.mrb[2].mxu0 }
 0x34b   :  { %v578_v29 = vmul.f32 -1.442695, %v528_v25  ;;  %v685_v30 = vpop.f32.mrb[3].mxu0 }
 0x34d   :  { %710 = vpow2.f32 %v578_v29 }
 0x357   :  { %v711_v31 = vpop.eup %710 }
 0x358   :  { %v536_v32 = vadd.f32 1.0, %v711_v31 }
 0x35a   :  { %712 = vrcp.f32 %v536_v32 }
 0x364   :  { %v713_v28 = vpop.eup %712 }
 0x365   :  { %539 = vst [vmem:[#allocation14] sm:$0x1] %v713_v28 }
 0x366   :  { %857 = shalt.err (!%p854_p10)
}
 0x367   :  { %s858_s9 = scalar_lea.hbm %s1042_s7, 16 }
 0x368   :  { %p859_p11 = scmp.ne.s32.totalorder %s1042_s7, %s858_s9  ;;  %p862_p12 = scmp.lt.u32.totalorder %s858_s9, %s1042_s7 }
 0x36a   :  { %p864_p13 = pnand %p862_p12, %p859_p11 }
 0x36c   :  { %867 = shalt.err (!%p864_p13)
}
 0x36d   :  { %549 = dma.vmem_to_hbm [thread:$0]  %s547_s28, 16, %s1042_s7, [#allocation5]  }
 0x36e   :  { %876 = dma.done.wait [#allocation5], 16  }
 0x36f   :  { %877 = vsyncadd [#allocation5], 4294967280 }
 0x370   :  { %553 = vsyncpa [#allocation4], 1 }
 0x371   :  { %554 = vsyncpa [#allocation7], 1 }
 0x372   :  { %555 = vsyncpa [#allocation10], 1 }
 0x373   :  { %556 = vsyncpa [#allocation13], 1 }
 0x374   :  { %557 = vsyncpa [#allocation5], 1 }

</bundles_post_ra>
